<compile_context>
chip_gen: v7x
topology: tpu7x:2x2x1
jax: 0.10.0
libtpu: 0.0.40
codegen_flags: <defaults>
</compile_context>

<pallas_src>
import functools
import math

import jax
import jax.numpy as jnp
from jax.experimental import pallas as pl
from jax.experimental.pallas import tpu as pltpu


# --------------------------------------------------------------------------- #
# Kernel                                                                      #
# --------------------------------------------------------------------------- #
def _random_layer_kernel(*refs, num_inputs, scale):
    """refs = (x_0, w_0, x_1, w_1, ..., x_{n-1}, w_{n-1}, out)."""
    out_ref = refs[-1]
    acc = None
    for i in range(num_inputs):
        x = refs[2 * i][...]
        w = refs[2 * i + 1][...]
        # Keep the MXU in native low-precision mode when W is stored narrow:
        # a mixed f32 x bf16 dot would be promoted to a (slower) f32 matmul.
        if x.dtype != w.dtype:
            x = x.astype(w.dtype)
        d = jnp.dot(x, w, preferred_element_type=jnp.float32)
        acc = d * scale if acc is None else acc * d
    out_ref[...] = acc.astype(out_ref.dtype)


# --------------------------------------------------------------------------- #
# Tile / VMEM budgeting helpers                                               #
# --------------------------------------------------------------------------- #
def _vmem_capacity_bytes():
    try:
        info = pltpu.get_tpu_info()
        cap = getattr(info, "vmem_capacity_bytes", None)
        if cap:
            return int(cap)
    except Exception:
        pass
    return 64 * 1024 * 1024  # conservative: v7x per-TensorCore VMEM


def _tile_footprint_bytes(tm, tn, k_list, x_itemsize, w_itemsize, out_itemsize):
    fp = 0
    for k in k_list:
        fp += 2 * tm * k * x_itemsize      # x tile, double-buffered
        fp += 2 * k * tn * w_itemsize      # W tile, double-buffered
    fp += 2 * tm * tn * out_itemsize       # output tile, double-buffered
    fp += 2 * tm * tn * 4                  # f32 accumulator + current dot result
    return fp


def _round_up(v, m):
    return ((v + m - 1) // m) * m


def _select_tiles(B, N, k_list, x_itemsize, w_itemsize, out_itemsize, budget):
    # tm: avoid padding entirely for small batches (full-B blocks are legal even
    # when B % 8 != 0); otherwise minimize padding around ~512-row tiles.
    if B <= 512:
        tm = B
    else:
        n_bt = pl.cdiv(B, 512)
        tm = _round_up(pl.cdiv(B, n_bt), 8)

    # tn candidates: lane-dense (multiple-of-128) divisors of N, descending.
    if N % 128 == 0:
        cands = [t for t in range(N, 0, -128) if N % t == 0]
    else:
        cands = [N]   # unaligned N must be taken as one full block

    def fits(tm_, tn_):
        return _tile_footprint_bytes(tm_, tn_, k_list, x_itemsize, w_itemsize,
                                     out_itemsize) <= budget

    # Prefer >= 2 N-tiles when the batch collapses to a single tile so both
    # v7x TensorCores get work on the parallel N axis (cheap on 1-TC chips).
    ordered = cands
    if tm >= B and N >= 256 and len(cands) > 1:
        multi = [t for t in cands if N // t >= 2]
        ordered = multi + [c for c in cands if c not in multi]

    for t in ordered:
        if fits(tm, t):
            return tm, t

    # Nothing fit: take the smallest lane-dense tn and shrink tm.
    tn = cands[-1]
    while tm > 8 and not fits(tm, tn):
        tm = max(8, _round_up(tm // 2, 8))
    return tm, tn


# --------------------------------------------------------------------------- #
# Public API                                                                  #
# --------------------------------------------------------------------------- #
def init_random_matrices(input_dim_list, output_dim, key,
                         weights_dtype=jnp.float32):
    """torch.randn(K_i, output_dim) equivalents.

    The (optional) low-precision cast happens ONCE here, never in the per-call
    forward path, so the bf16 path actually saves HBM traffic.
    """
    keys = jax.random.split(key, len(input_dim_list))
    return [
        jax.random.normal(k, (d, output_dim), dtype=jnp.float32)
        .astype(weights_dtype)
        for k, d in zip(keys, input_dim_list)
    ]
    # TODO(synk): add an fp8 (e4m3) storage option for v7x's bf16+fp8 MXU path.


def random_layer(input_list, random_matrices, output_dim, *,
                 tm=None, tn=None, out_dtype=jnp.float32):
    """Fused Pallas implementation of RandomLayer.forward."""
    num_inputs = len(input_list)
    assert num_inputs == len(random_matrices) and num_inputs >= 1
    B = input_list[0].shape[0]
    N = output_dim
    scale = 1.0 / math.pow(float(output_dim), 1.0 / num_inputs)

    k_list = []
    for x, w in zip(input_list, random_matrices):
        assert x.ndim == 2 and x.shape[0] == B
        assert w.shape == (x.shape[1], N)
        k_list.append(x.shape[1])

    x_itemsize = max(jnp.dtype(x.dtype).itemsize for x in input_list)
    w_itemsize = max(jnp.dtype(w.dtype).itemsize for w in random_matrices)
    out_itemsize = jnp.dtype(out_dtype).itemsize

    capacity = _vmem_capacity_bytes()
    budget = int(0.70 * capacity)

    auto_tm, auto_tn = _select_tiles(B, N, k_list, x_itemsize, w_itemsize,
                                     out_itemsize, budget)
    tm = auto_tm if tm is None else tm
    tn = auto_tn if tn is None else tn
    if tn != N:
        assert N % tn == 0 and tn % 128 == 0, "tn must divide N, 128-aligned"
    if tm != B:
        assert tm % 8 == 0, "tm must be a multiple of 8 (or equal B)"

    n_b_tiles = pl.cdiv(B, tm)
    B_pad = n_b_tiles * tm
    n_n_tiles = N // tn

    footprint = _tile_footprint_bytes(tm, tn, k_list, x_itemsize, w_itemsize,
                                      out_itemsize)
    vmem_limit = int(min(0.9 * capacity,
                         max(2 * footprint + (4 << 20), 32 << 20)))

    kernel = functools.partial(_random_layer_kernel,
                               num_inputs=num_inputs, scale=scale)

    in_specs = []
    operands = []
    for x, w in zip(input_list, random_matrices):
        K = x.shape[1]
        if B_pad != B:  # only hit when B > 512 and not divisible by tm
            x = jnp.pad(x, ((0, B_pad - B), (0, 0)))
        # Grid is (j over N tiles, i over batch tiles); batch is the inner
        # (sequential) axis, so W's block index (0, j) is constant across
        # consecutive steps and Pallas keeps it VMEM-resident.
        in_specs.append(pl.BlockSpec((tm, K), lambda j, i: (i, 0)))
        in_specs.append(pl.BlockSpec((K, tn), lambda j, i: (0, j)))
        operands.extend([x, w])

    out_spec = pl.BlockSpec((tm, tn), lambda j, i: (i, j))

    flops = 2 * B_pad * N * sum(k_list)
    bytes_accessed = (sum(B_pad * k * x_itemsize for k in k_list)
                      + sum(k * N * w_itemsize for k in k_list)
                      + B_pad * N * out_itemsize)
    cost = pl.CostEstimate(flops=flops, transcendentals=0,
                           bytes_accessed=bytes_accessed)

    out = pl.pallas_call(
        kernel,
        out_shape=jax.ShapeDtypeStruct((B_pad, N), out_dtype),
        grid_spec=pltpu.PrefetchScalarGridSpec(
            num_scalar_prefetch=0,
            grid=(n_n_tiles, n_b_tiles),   # batch innermost -> W stays resident
            in_specs=in_specs,
            out_specs=out_spec,
        ),
        compiler_params=pltpu.CompilerParams(
            dimension_semantics=("parallel", "arbitrary"),
            vmem_limit_bytes=vmem_limit,
        ),
        cost_estimate=cost,
    )(*operands)

    if B_pad != B:
        out = out[:B]
    return out


def random_layer_reference(input_list, random_matrices, output_dim):
    """Pure-JAX reference matching the PyTorch forward."""
    rl = [jnp.dot(x, w.astype(jnp.float32))
          for x, w in zip(input_list, random_matrices)]
    out = rl[0] / math.pow(float(output_dim), 1.0 / len(rl))
    for single in rl[1:]:
        out = out * single
    return out


# --------------------------------------------------------------------------- #
# Demo / self-test                                                            #
# --------------------------------------------------------------------------- #
if __name__ == "__main__":
    batch = 8
    input_dim_list = [32, 8]      # e.g. CDAN: feature dim, class-probability dim
    output_dim = 1024

    root = jax.random.PRNGKey(0)
    k_w, k_x, k_x2 = jax.random.split(root, 3)

    random_matrices = init_random_matrices(input_dim_list, output_dim, k_w)
    xkeys = jax.random.split(k_x, len(input_dim_list))
    input_list = [
        jax.random.normal(xkeys[i], (batch, input_dim_list[i]), dtype=jnp.float32)
        for i in range(len(input_dim_list))
    ]

    # 1) f32 path; single batch tile, N split into 2 lane-dense tiles.
    out = jax.block_until_ready(random_layer(input_list, random_matrices, output_dim))
    ref = random_layer_reference(input_list, random_matrices, output_dim)
    assert out.shape == (batch, output_dim)
    assert jnp.allclose(out, ref, atol=1e-3, rtol=1e-3), "mismatch (f32 path)"

    # 2) Larger, non-multiple-of-8 batch: tm = B -> no pad / output-slice copy.
    batch2 = 260
    x2keys = jax.random.split(k_x2, len(input_dim_list))
    input_list2 = [
        jax.random.normal(x2keys[i], (batch2, input_dim_list[i]), dtype=jnp.float32)
        for i in range(len(input_dim_list))
    ]
    out2 = jax.block_until_ready(random_layer(input_list2, random_matrices, output_dim))
    ref2 = random_layer_reference(input_list2, random_matrices, output_dim)
    assert out2.shape == (batch2, output_dim)
    assert jnp.allclose(out2, ref2, atol=1e-3, rtol=1e-3), "mismatch (no-pad path)"

    # 3) bf16-stored W (cast hoisted to init): the kernel casts x to bf16 and
    #    runs the MXU in native bf16 with f32 accumulation.
    random_matrices_bf16 = init_random_matrices(
        input_dim_list, output_dim, k_w, weights_dtype=jnp.bfloat16)
    out3 = jax.block_until_ready(
        random_layer(input_list, random_matrices_bf16, output_dim))
    ref3 = random_layer_reference(
        [x.astype(jnp.bfloat16).astype(jnp.float32) for x in input_list],
        random_matrices_bf16, output_dim)
    assert out3.shape == (batch, output_dim)
    assert jnp.allclose(out3, ref3, atol=2e-2, rtol=2e-2), "mismatch (bf16 W path)"

    print("KERNEL_OK")
</pallas_src>

<mosaic_0001>
module attributes {stable_mosaic.version = 11 : i64} {
  func.func @_random_layer_kernel(%arg0: i32, %arg1: i32, %arg2: memref<8x32xf32, #tpu.memory_space<vmem>>, %arg3: memref<32x512xf32, #tpu.memory_space<vmem>>, %arg4: memref<8x8xf32, #tpu.memory_space<vmem>>, %arg5: memref<8x512xf32, #tpu.memory_space<vmem>>, %arg6: memref<8x512xf32, #tpu.memory_space<vmem>>) attributes {dimension_semantics = [#tpu.dimension_semantics<parallel>, #tpu.dimension_semantics<arbitrary>], iteration_bounds = array<i64: 2, 1>, scalar_prefetch = 0 : i64, scratch_operands = 0 : i64, tpu.core_type = #tpu.core_type<tc>, window_params = [{transform_indices = @transform_0, window_bounds = array<i64: 8, 32>}, {transform_indices = @transform_1, window_bounds = array<i64: 32, 512>}, {transform_indices = @transform_2, window_bounds = array<i64: 8, 8>}, {transform_indices = @transform_3, window_bounds = array<i64: 8, 512>}, {transform_indices = @transform_4, window_bounds = array<i64: 8, 512>}]} {
    %c0 = arith.constant 0 : index
    %c0_0 = arith.constant 0 : index
    %0 = vector.load %arg2[%c0, %c0_0] : memref<8x32xf32, #tpu.memory_space<vmem>>, vector<8x32xf32>
    %c0_1 = arith.constant 0 : index
    %c0_2 = arith.constant 0 : index
    %1 = vector.load %arg3[%c0_1, %c0_2] : memref<32x512xf32, #tpu.memory_space<vmem>>, vector<32x512xf32>
    %cst = arith.constant dense<0.000000e+00> : vector<8x512xf32>
    %2 = tpu.matmul %0, %1, %cst {dimension_numbers = #tpu.dot_dimension_numbers<[1], [0], [0], [1], [0, 0, 1, 1], [], []>} : vector<8x32xf32>, vector<32x512xf32>, vector<8x512xf32> -> vector<8x512xf32>
    %cst_3 = arith.constant 3.125000e-02 : f32
    %3 = vector.broadcast %cst_3 : f32 to vector<8x512xf32>
    %4 = arith.mulf %2, %3 : vector<8x512xf32>
    %c0_4 = arith.constant 0 : index
    %c0_5 = arith.constant 0 : index
    %5 = vector.load %arg4[%c0_4, %c0_5] : memref<8x8xf32, #tpu.memory_space<vmem>>, vector<8x8xf32>
    %c0_6 = arith.constant 0 : index
    %c0_7 = arith.constant 0 : index
    %6 = vector.load %arg5[%c0_6, %c0_7] : memref<8x512xf32, #tpu.memory_space<vmem>>, vector<8x512xf32>
    %cst_8 = arith.constant dense<0.000000e+00> : vector<8x512xf32>
    %7 = tpu.matmul %5, %6, %cst_8 {dimension_numbers = #tpu.dot_dimension_numbers<[1], [0], [0], [1], [0, 0, 1, 1], [], []>} : vector<8x8xf32>, vector<8x512xf32>, vector<8x512xf32> -> vector<8x512xf32>
    %8 = arith.mulf %4, %7 : vector<8x512xf32>
    %c0_9 = arith.constant 0 : index
    %c0_10 = arith.constant 0 : index
    %9 = vector.load %arg6[%c0_9, %c0_10] : memref<8x512xf32, #tpu.memory_space<vmem>>, vector<8x512xf32>
    tpu.vector_store %arg6[%c0_9, %c0_10], %8 {strides = array<i32>} : memref<8x512xf32, #tpu.memory_space<vmem>>, vector<8x512xf32>,
    return
  }
  func.func @transform_0(%arg0: i32, %arg1: i32) -> (i32, i32) {
    %c0_i32 = arith.constant 0 : i32
    %c0_i32_0 = arith.constant 0 : i32
    return %arg1, %c0_i32 : i32, i32
  }
  func.func @transform_1(%arg0: i32, %arg1: i32) -> (i32, i32) {
    %c0_i32 = arith.constant 0 : i32
    %c0_i32_0 = arith.constant 0 : i32
    return %c0_i32, %arg0 : i32, i32
  }
  func.func @transform_2(%arg0: i32, %arg1: i32) -> (i32, i32) {
    %c0_i32 = arith.constant 0 : i32
    %c0_i32_0 = arith.constant 0 : i32
    return %arg1, %c0_i32 : i32, i32
  }
  func.func @transform_3(%arg0: i32, %arg1: i32) -> (i32, i32) {
    %c0_i32 = arith.constant 0 : i32
    %c0_i32_0 = arith.constant 0 : i32
    return %c0_i32, %arg0 : i32, i32
  }
  func.func @transform_4(%arg0: i32, %arg1: i32) -> (i32, i32) {
    %c0_i32 = arith.constant 0 : i32
    return %arg1, %arg0 : i32, i32
  }
}

</mosaic_0001>

<bundles_post_ra>
// kernel: tpu_custom_call.1
= control target key start
LH: loop header
LB: loop body
LE: loop exit
PB: predicated region body
PF: predicated region fallthrough
CT: control target
= control target key end

     0   :  { %s1484_s0 = inlined_call_operand.hbm [shape: f32[8,32], index: 0, kind: input, shape index: {}]   ;;  %s1485_s1 = inlined_call_operand.hbm [shape: f32[32,1024], index: 1, kind: input, shape index: {}]   ;;  %s1486_s2 = inlined_call_operand.hbm [shape: f32[8,8], index: 2, kind: input, shape index: {}]   ;;  %s1487_s3 = inlined_call_operand.hbm [shape: f32[8,1024], index: 3, kind: input, shape index: {}]   ;;  %s1488_s4 = inlined_call_operand.hbm [shape: f32[8,1024], index: 4, kind: output, shape index: {}]  }
   0x1   :  { %1496 = sst [smem:[#allocation17_spill]] %s1484_s0 }
   0x2   :  { %1497 = sst [smem:[#allocation18_spill]] %s1485_s1 }
   0x3   :  { %1498 = sst [smem:[#allocation19_spill]] %s1486_s2 }
   0x4   :  { %9 = vsyncpa [#allocation3], 0 }
   0x5   :  { %10 = vsyncpa [#allocation6], 0 }
   0x6   :  { %12 = vsyncpa [#allocation6 + $0x1], 0 }
   0x7   :  { %13 = vsyncpa [#allocation9], 0 }
   0x8   :  { %15 = vsyncpa [#allocation9 + $0x1], 0 }
   0x9   :  { %16 = vsyncpa [#allocation4], 0 }
   0xa   :  { %18 = vsyncpa [#allocation4 + $0x1], 0  ;;  %s1166_s15 = smov 0   ;;  %s1168_s16 = smov 0  }
   0xb   :  { %s1170_s17 = smov 0   ;;  %s1172_s18 = smov 0  }
   0xc   :  { %s1174_s19 = smov 0   ;;  %s1176_s20 = smov 0  }
   0xd LB: > { %s1197_s21 = sadd.s32 4294967295, %s1130_s20   ;;  %s783_s22 = sadd.s32 4294967294, %s1130_s20   ;;  %s1130_s20 = sphi %s1176_s20, %s24_s20   ;;  %s1126_s19 = sphi %s1174_s19, %s1526_s19   ;;  %s1122_s18 = sphi %s1172_s18, %s1525_s18   ;;  %s1118_s17 = sphi %s1170_s17, %s1524_s17   ;;  %s1114_s16 = sphi %s1168_s16, %s1523_s16   ;;  %s1110_s15 = sphi %s1166_s15, %s1522_s15  }
   0xe   : > { %s69_s23 = sadd.s32 1, %s1118_s17  ;;  %p76_p0 = scmp.ne.s32.totalorder %s1118_s17, %s1114_s16 }
   0xf   : > { %p77_p1 = scmp.eq.s32.totalorder %s1130_s20, 0  ;;  %p82_p2 = scmp.ne.s32.totalorder %s1114_s16, %s1110_s15 }
  0x10   : > { %p1489_p3 = scmp.eq.s32.totalorder %s1197_s21, 0  ;;  %p160_p4 = scmp.eq.s32.totalorder %s1197_s21, 1 }
  0x11   : > { %p1208_p5 = por %p77_p1, %p76_p0  ;;  %p166_p6 = scmp.eq.s32.totalorder %s783_s22, 1 }
  0x12   : > { %p1214_p7 = por %p1489_p3, %p82_p2  ;;  %p1218_p8 = por %p160_p4, %p76_p0 }
  0x13   : > { %p1222_p9 = por %p166_p6, %p82_p2  ;;  %p784_p10 = scmp.ge.s32.totalorder %s1130_s20, 1 }
  0x14   : > { %s1500_s25 = scalar_select %p1214_p7, 1, 0 }
  0x15   : > { %s1501_s26 = scalar_select %p1218_p8, 1, 0 }
  0x16   : > { %s1502_s27 = scalar_select %p1222_p9, 1, 0 }
  0x17   : > { %p173_p11 = scmp.lt.s32.totalorder %s1130_s20, 3  ;;  %s1132_s29 = smov [#allocation7]  }
  0x18   : > { %s201_s30 = sshll.u32 %s1132_s29, 4  ;;  %p862_p1 = scmp.lt.s32.totalorder %s1130_s20, 2  ;;  %s202_s30 = int_to_ptr.vmem [resolvable:$true] %s201_s30 }
  0x19   : > { %p1229_p13 = pnand %p784_p10, %p173_p11  ;;  %s1133_s7 = smov [#allocation2]  }
  0x1a   : > { %p1238_p4 = pnand %p862_p1, %p1208_p5  ;;  %s188_s8 = sshll.u32 %s1133_s7, 4  ;;  %s1248_s8 = int_to_ptr.vmem [resolvable:$true] %s188_s8 }
  0x1b   : > { %s1503_s28 = scalar_select %p1229_p13, 1, 0 }
  0x1c   : > { %p842_p0 = pneg %p1229_p13  ;;  %s1506_s2 = sld [smem:[#allocation19_spill]] }
  0x1d   : > { %s1504_s5 = scalar_select %p1238_p4, 1, 0 }
  0x1e   : > { %p1244_p2 = pnand %p842_p0, %p1489_p3 }
  0x20   : > { %p922_p6 = pneg %p1244_p2 }
  0x22   : > { %s920_s11 = scalar_lea.hbm %s1506_s2, 128 }
  0x23   : > { %p921_p5 = scmp.ne.s32.totalorder %s1506_s2, %s920_s11  ;;  %p927_p1 = scmp.lt.u32.totalorder %s920_s11, %s1506_s2 }
  0x25   : > { %p923_p10 = pnand %p922_p6, %p921_p5 }
  0x27   : > { %p924_p11 = pneg %p923_p10 }
  0x29   : > { %p929_p0 = pnand %p927_p1, %p924_p11 }
  0x2b   : > { %932 = shalt.err (!%p929_p0)
}
  0x2c   : > { %s933_s24 = scalar_lea.vmem %s202_s30, 128  ;;  %p941_p8 = scmp.lt.s32.totalorder %s202_s30, %s202_s30 }
  0x2d   : > { %p934_p12 = scmp.ne.s32.totalorder %s202_s30, %s933_s24  ;;  %p942_p7 = scmp.lt.s32.totalorder %s933_s24, %s933_s24 }
  0x2f   : > { %p936_p3 = pnand %p934_p12, %p922_p6  ;;  %p943_p13 = por %p942_p7, %p941_p8 }
  0x31   : > { %p937_p9 = pneg %p936_p3 }
  0x33   : > { %p944_p4 = pnand %p943_p13, %p937_p9 }
  0x35   : > { %947 = shalt.err (!%p944_p4)
}
  0x36   : > { %848 = dma.hbm_to_vmem [thread:$0]  (!%p1244_p2), %s1506_s2, 128, %s202_s30, [#allocation6]  }
  0x37   : > { %s1507_s0 = sld [smem:[#allocation17_spill]] }
  0x3d   : > { %s948_s11 = scalar_lea.hbm %s1507_s0, 128 }
  0x3e   : > { %p949_p3 = scmp.ne.s32.totalorder %s1507_s0, %s948_s11  ;;  %p955_p9 = scmp.lt.u32.totalorder %s948_s11, %s1507_s0 }
  0x40   : > { %p951_p7 = pnand %p949_p3, %p922_p6 }
  0x42   : > { %p952_p8 = pneg %p951_p7 }
  0x44   : > { %p957_p12 = pnand %p955_p9, %p952_p8 }
  0x46   : > { %960 = shalt.err (!%p957_p12)
}
  0x47   : > { %s961_s30 = scalar_lea.vmem %s1248_s8, 128  ;;  %p969_p10 = scmp.lt.s32.totalorder %s1248_s8, %s1248_s8 }
  0x48   : > { %p962_p13 = scmp.ne.s32.totalorder %s1248_s8, %s961_s30  ;;  %p970_p11 = scmp.lt.s32.totalorder %s961_s30, %s961_s30 }
  0x4a   : > { %p964_p4 = pnand %p962_p13, %p922_p6  ;;  %p971_p1 = por %p970_p11, %p969_p10 }
  0x4c   : > { %p965_p5 = pneg %p964_p4 }
  0x4e   : > { %p972_p0 = pnand %p971_p1, %p965_p5 }
  0x50   : > { %975 = shalt.err (!%p972_p0)
}
  0x51   : > { %845 = dma.hbm_to_vmem [thread:$0]  (!%p1244_p2), %s1507_s0, 128, %s1248_s8, [#allocation3]  }
  0x52   : > { %s212_s7 = sand.u32 1, %s1130_s20   ;;  %s36_s9 = sadd.s32 1, %s1126_s19 }
  0x53   : > { %s1300_s10 = sand.u32 1, %s1118_s17   ;;  %p38_p6 = scmp.ge.s32.totalorder %s36_s9, 2 }
  0x54   : > { %s788_s6 = sshll.u32 %s1300_s10, 7  ;;  %s1494_s11 = sshll.u32 %s1126_s19, 9 }
  0x55   : > { %s1528_s9 = smov (%p38_p6, %s36_s9), 0  ;;  %s1509_s1 = sld [smem:[#allocation18_spill]] }
  0x56   : > { %1508 = sst [smem:[#allocation16_spill]] %s1528_s9  ;;  %s216_s8 = scalar_lea.vmem [#allocation5], %s788_s6 }
  0x57   : > { %s223_s22 = sshll.u32 %s216_s8, 4  ;;  %s66_s30 = ssub.s32 %s1126_s19, %s1528_s9  ;;  %s1315_s22 = int_to_ptr.vmem [resolvable:$true] %s223_s22 }
  0x58   : > { %p67_p2 = scmp.eq.s32.totalorder %s66_s30, 0  ;;  %s1322_s29 = scalar_lea.sflag [#allocation6], %s212_s7 }
  0x59   : > { %p1510_p7 = scmp.ne.s32.totalorder %s1504_s5, 0 }
  0x5a   : > { %s1320_s24 = scalar_select %p67_p2, %s1118_s17, %s69_s23  }
  0x5b   : > { %s1311_s14 = scalar_lea.hbm %s1509_s1, %s1494_s11  ;;  %p978_p8 = pneg %p1510_p7 }
  0x5c   : > { %s976_s0 = scalar_lea.hbm %s1311_s14, 2048  ;;  %s981_s13 = scalar_lea.hbm %s1509_s1, 4096 }
  0x5d   : > { %p977_p3 = scmp.ne.s32.totalorder %s1311_s14, %s976_s0  ;;  %p982_p13 = scmp.lt.u32.totalorder %s1311_s14, %s1509_s1 }
  0x5e   : > { %p983_p4 = scmp.lt.u32.totalorder %s981_s13, %s976_s0  ;;  %p985_p10 = scmp.lt.u32.totalorder %s976_s0, %s1311_s14 }
  0x5f   : > { %p979_p9 = pnand %p978_p8, %p977_p3 }
  0x60   : > { %p984_p5 = por %p983_p4, %p982_p13 }
  0x61   : > { %p980_p12 = pneg %p979_p9 }
  0x62   : > { %p986_p11 = por %p985_p10, %p984_p5 }
  0x64   : > { %p987_p1 = pnand %p986_p11, %p980_p12 }
  0x66   : > { %990 = shalt.err (!%p987_p1)
}
  0x67   : > { %s991_s23 = scalar_lea.vmem %s1315_s22, 2048  ;;  %s1134_s7 = smov [#allocation5]  }
  0x68   : > { %p992_p0 = scmp.ne.s32.totalorder %s1315_s22, %s991_s23  ;;  %s996_s30 = sshll.u32 %s1134_s7, 4  ;;  %s997_s30 = int_to_ptr.vmem [resolvable:$false] %s996_s30 }
  0x69   : > { %s998_s11 = scalar_lea.vmem %s997_s30, 4096  ;;  %p999_p3 = scmp.lt.s32.totalorder %s1315_s22, %s997_s30 }
  0x6a   : > { %p994_p6 = pnand %p992_p0, %p978_p8  ;;  %p1000_p9 = scmp.lt.s32.totalorder %s998_s11, %s991_s23 }
  0x6c   : > { %p995_p2 = pneg %p994_p6  ;;  %p1001_p13 = por %p1000_p9, %p999_p3 }
  0x6e   : > { %p1002_p4 = pnand %p1001_p13, %p995_p2 }
  0x70   : > { %1005 = shalt.err (!%p1002_p4)
}
  0x71   : > { %s1135_s0 = smov 1024   ;;  %s1136_s6 = smov 512  }
  0x72   : > { %s1137_s12 = smov 32   ;;  %s791_s13 = sshll.u32 %s1300_s10, 5 }
  0x73   : > { %852 = dma.hbm_to_vmem [thread:$0]  (!%p1510_p7), %s1311_s14, 2048, %s1315_s22, %s1322_s29, %s1135_s0, %s1136_s6, %s1137_s12  }
  0x74   : > { %s1511_s8 = sshll.u32 %s1126_s19, 9  ;;  %s237_s11 = scalar_lea.vmem [#allocation8], %s791_s13 }
  0x75   : > { %s1356_s30 = scalar_lea.hbm %s1487_s3, %s1511_s8  ;;  %s245_s1 = sshll.u32 %s237_s11, 4  ;;  %s246_s1 = int_to_ptr.vmem [resolvable:$true] %s245_s1 }
  0x76   : > { %s234_s2 = scalar_lea.sflag [#allocation9], %s1300_s10  ;;  %s1006_s9 = scalar_lea.hbm %s1356_s30, 512 }
  0x77   : > { %p1007_p12 = scmp.ne.s32.totalorder %s1356_s30, %s1006_s9  ;;  %s1011_s29 = scalar_lea.hbm %s1487_s3, 1024 }
  0x78   : > { %p1012_p11 = scmp.lt.u32.totalorder %s1356_s30, %s1487_s3  ;;  %p1013_p1 = scmp.lt.u32.totalorder %s1011_s29, %s1006_s9 }
  0x79   : > { %p1009_p5 = pnand %p1007_p12, %p978_p8  ;;  %p1015_p6 = scmp.lt.u32.totalorder %s1006_s9, %s1356_s30 }
  0x7a   : > { %p1014_p0 = por %p1013_p1, %p1012_p11 }
  0x7b   : > { %p1010_p10 = pneg %p1009_p5 }
  0x7c   : > { %p1016_p2 = por %p1015_p6, %p1014_p0 }
  0x7e   : > { %p1017_p3 = pnand %p1016_p2, %p1010_p10 }
  0x80   : > { %1020 = shalt.err (!%p1017_p3)
}
  0x81   : > { %s1021_s10 = scalar_lea.vmem %s246_s1, 512  ;;  %s1138_s12 = smov [#allocation8]  }
  0x82   : > { %p1022_p9 = scmp.ne.s32.totalorder %s246_s1, %s1021_s10  ;;  %s1026_s13 = sshll.u32 %s1138_s12, 4  ;;  %s1027_s13 = int_to_ptr.vmem [resolvable:$false] %s1026_s13 }
  0x83   : > { %s1028_s8 = scalar_lea.vmem %s1027_s13, 1024  ;;  %p1029_p12 = scmp.lt.s32.totalorder %s246_s1, %s1027_s13 }
  0x84   : > { %p1024_p13 = pnand %p1022_p9, %p978_p8  ;;  %p1030_p5 = scmp.lt.s32.totalorder %s1028_s8, %s1021_s10 }
  0x86   : > { %p1025_p4 = pneg %p1024_p13  ;;  %p1031_p1 = por %p1030_p5, %p1029_p12 }
  0x88   : > { %p1032_p11 = pnand %p1031_p1, %p1025_p4 }
  0x8a   : > { %1035 = shalt.err (!%p1032_p11)
}
  0x8b   : > { %855 = dma.hbm_to_vmem [thread:$0]  (!%p1510_p7), %s1356_s30, 512, %s246_s1, %s234_s2  }
  0x8c   : > { %p1512_p10 = scmp.ne.s32.totalorder %s1503_s28, 0 }
  0x8d   : > { %p1513_p0 = scmp.eq.s32.totalorder (!%p1512_p10), %s1197_s21, 0 }
  0x8e   : > { %254 = sbr.rel (%p1512_p10) target bundleno = 407 (0x197), region = 36 }
  0x95   : > { %1089 = dma.done.wait (%p1513_p0), [#allocation3], 128   ;;  %p1514_p8 = pmov %p1513_p0 }
  0x96   : > { %s260_s9 = sand.u32 1, %s1197_s21   ;;  %s1386_s7 = sand.u32 1, %s1114_s16  }
  0x97   : > { %1091 = vsyncadd (%p1514_p8), [#allocation3], 4294967168  ;;  %s796_s23 = sshll.u32 %s1386_s7, 7  ;;  %s261_s5 = scalar_lea.sflag [#allocation6], %s260_s9 }
  0x98   : > { %s1389_s11 = scalar_lea.vmem [#allocation5], %s796_s23  ;;  %p1515_p7 = scmp.ne.s32.totalorder %s1500_s25, 0 }
  0x9a   : > { %1093 = dma.done.wait (%p1515_p7), %s261_s5, 2048  }
  0x9b   : > { %1095 = vsyncadd (%p1515_p7), %s261_s5, 4294965248  ;;  %p1516_p6 = pmov %p1513_p0 }
  0x9c   : > { %p1517_p2 = pmov %p1513_p0 }
  0x9d   : > { %1097 = dma.done.wait (%p1516_p6), [#allocation6], 128  }
  0x9e   : > { %1099 = vsyncadd (%p1517_p2), [#allocation6], 4294967168  ;;  %s798_s1 = sshll.u32 %s1386_s7, 5  ;;  %s274_s2 = scalar_lea.sflag [#allocation9], %s1386_s7 }
  0x9f   : > { %s1403_s28 = scalar_lea.vmem [#allocation8], %s798_s1 }
  0xa0   : > { %1101 = dma.done.wait (%p1515_p7), %s274_s2, 512  }
  0xa1   : > { %1103 = vsyncadd (%p1515_p7), %s274_s2, 4294966784  ;;  %v1139_v0 = vmov 0.0   ;;  %v312_v1 = vld [vmem:[%s1389_s11 + $0x8] sm:$0xff]  ;;  %v314_v3 = vld [vmem:[%s1389_s11 + $0x18] sm:$0xff]  ;;  %vm327_vm0 = vcmask 261120   ;;  %vm482_vm1 = vcmask 64512  }
  0xa2   : > { %395 = vmatprep.mubr.f32.mxu0 %v1139_v0  ;;  %466 = vmatprep.mubr.f32.mxu1 %v1139_v0  ;;  %v316_v2 = vld [vmem:[%s1389_s11 + $0x28] sm:$0xff]  ;;  %v318_v5 = vld [vmem:[%s1389_s11 + $0x38] sm:$0xff]  ;;  %v311_v6 = vld [vmem:[%s1389_s11] sm:$0xff]  ;;  %s811_s21 = sshll.u32 %s1122_s18, 9  ;;  %s306_s25 = scalar_lea.vmem [#allocation10], %s798_s1 }
  0xa3   : > { %v812_v4 = vpack.c.bf16 %v316_v2, %v312_v1  ;;  %v315_v7 = vld [vmem:[%s1389_s11 + $0x20] sm:$0xff]  ;;  %v820_v8 = vpack.c.bf16 %v318_v5, %v314_v3  ;;  %v313_v10 = vld [vmem:[%s1389_s11 + $0x10] sm:$0xff]  ;;  %v320_v12 = vld [vmem:[%s1389_s11 + $0x48] sm:$0xff]  ;;  %s653_s30 = sshll.u32 %s306_s25, 4  ;;  %s1435_s29 = scalar_lea.hbm %s1488_s4, %s811_s21  ;;  %s1437_s30 = int_to_ptr.vmem [resolvable:$true] %s653_s30 }
  0xa4   : > { %v814_v9 = vpack.c.bf16 %v315_v7, %v311_v6  ;;  %v317_v11 = vld [vmem:[%s1389_s11 + $0x30] sm:$0xff]  ;;  %v324_v14 = vld [vmem:[%s1389_s11 + $0x68] sm:$0xff]  ;;  %v322_v15 = vld [vmem:[%s1389_s11 + $0x58] sm:$0xff]  ;;  %s637_s18 = scalar_lea.sflag [#allocation4], %s1386_s7  ;;  %s1036_s0 = scalar_lea.vmem %s1437_s30, 512 }
  0xa5   : > { %813 = vmatprep.subr.bf16.mxu0 %v812_v4  ;;  %v822_v13 = vpack.c.bf16 %v317_v11, %v313_v10  ;;  %v326_v16 = vld [vmem:[%s1389_s11 + $0x78] sm:$0xff]  ;;  %821 = vmatprep.subr.bf16.mxu1 %v820_v8  ;;  %v816_v17 = vpack.c.bf16 %v324_v14, %v320_v12  ;;  %v319_v19 = vld [vmem:[%s1389_s11 + $0x40] sm:$0xff]  ;;  %v321_v21 = vld [vmem:[%s1389_s11 + $0x50] sm:$0xff]  ;;  %p1037_p3 = scmp.ne.s32.totalorder %s1437_s30, %s1036_s0  ;;  %p1518_p9 = scmp.ne.s32.totalorder %s1501_s26, 0 }
  0xa6   : > { %815 = vmatpush1.bf16.msra.mxu0 %v814_v9  ;;  %v824_v18 = vpack.c.bf16 %v326_v16, %v322_v15  ;;  %v323_v20 = vld [vmem:[%s1389_s11 + $0x60] sm:$0xff]  ;;  %v325_v23 = vld [vmem:[%s1389_s11 + $0x70] sm:$0xff]  ;;  %v310_v27 = vld [vmem:[#allocation2] sm:$0xff]  ;;  %s1140_s6 = smov [#allocation10]  }
  0xa7   : > { %823 = vmatpush1.bf16.msra.mxu1 %v822_v13  ;;  %v818_v22 = vpack.c.bf16 %v323_v20, %v319_v19  ;;  %817 = vmatprep.subr.bf16.mxu0 %v816_v17  ;;  %v826_v24 = vpack.c.bf16 %v325_v23, %v321_v21  ;;  %v479_v25 = vld [vmem:[%s1403_s28 + $0x8] sm:$0xff]  ;;  %v481_v26 = vld [vmem:[%s1403_s28 + $0x18] sm:$0xff]  ;;  %v478_v28 = vld [vmem:[%s1403_s28] sm:$0xff]  ;;  %p1038_p13 = pnand %p1037_p3, %p1518_p9  ;;  %s1040_s10 = sshll.u32 %s1140_s6, 4  ;;  %s1041_s10 = int_to_ptr.vmem [resolvable:$false] %s1040_s10 }
  0xa8   : > { %825 = vmatprep.subr.bf16.mxu1 %v824_v18  ;;  %v480_v29 = vld [vmem:[%s1403_s28 + $0x10] sm:$0xff]  ;;  %v477_v30 = vld [vmem:[#allocation7] sm:$0xff]  ;;  %s1042_s12 = scalar_lea.vmem %s1041_s10, 1024  ;;  %p1043_p12 = scmp.lt.s32.totalorder %s1437_s30, %s1041_s10 }
  0xa9   : > { %p1039_p4 = pneg %p1038_p13  ;;  %p1044_p5 = scmp.lt.s32.totalorder %s1042_s12, %s1036_s0 }
  0xaa   : > { %819 = vmatpush1.bf16.msra.mxu0 %v818_v22 }
  0xab   : > { %827 = vmatpush1.bf16.msra.mxu1 %v826_v24  ;;  %486 = vmatprep.subr.mxu0 %v479_v25  ;;  %p1045_p1 = por %p1044_p5, %p1043_p12 }
  0xac   : > { %557 = vmatprep.subr.mxu1 %v481_v26 }
  0xad   : > { %800 = vmatmul.mubr.msk.f32.vlgmr.msra.gmra.mrb[0].mxu0 %vm327_vm0, %v310_v27  ;;  %p1046_p11 = pnand %p1045_p1, %p1039_p4 }
  0xae   : > { %801 = vmatmul.mubr.msk.f32.vlgmr.msra.gmra.mrb[0].mxu1 %vm327_vm0, %v310_v27  ;;  %487 = vmatpush1.msra.mxu0 %v478_v28 }
  0xaf   : > { %558 = vmatpush1.msra.mxu1 %v480_v29  ;;  %550 = vmatprep.mubr.f32.mxu0 %v1139_v0 }
  0xb0   : > { %621 = vmatprep.mubr.f32.mxu1 %v1139_v0 }
  0xb1   : > { %802 = vmatmul.mubr.msk.f32.vlgmr.msra.gmra.mrb[2].mxu0 %vm482_vm1, %v477_v30 }
  0xb2   : > { %803 = vmatmul.mubr.msk.f32.vlgmr.msra.gmra.mrb[2].mxu1 %vm482_vm1, %v477_v30 }
 0x180   : > { %v397_v31 = vpop.f32.mrb[0].mxu0 }
 0x181   : > { %v468_v32 = vpop.f32.mrb[0].mxu1  ;;  %v399_v33 = vpop.f32.mrb[1].mxu0  ;;  %v473_v35 = vmul.f32 0.03125, %v397_v31 }
 0x182   : > { %v470_v34 = vpop.f32.mrb[1].mxu1  ;;  %v475_v36 = vmul.f32 0.03125, %v468_v32  ;;  %v474_v37 = vmul.f32 0.03125, %v399_v33 }
 0x183   : > { %v476_v39 = vmul.f32 0.03125, %v470_v34 }
 0x184   : > { %v552_v38 = vpop.f32.mrb[2].mxu0 }
 0x185   : > { %v628_v40 = vmul.f32 %v552_v38, %v473_v35  ;;  %v623_v41 = vpop.f32.mrb[2].mxu1  ;;  %v554_v42 = vpop.f32.mrb[3].mxu0 }
 0x186   : > { %v630_v43 = vmul.f32 %v623_v41, %v475_v36  ;;  %v629_v44 = vmul.f32 %v554_v42, %v474_v37  ;;  %v625_v45 = vpop.f32.mrb[3].mxu1 }
 0x187   : > { %632 = vst [vmem:[%s306_s25] sm:$0xff] %v628_v40  ;;  %v631_v46 = vmul.f32 %v625_v45, %v476_v39 }
 0x188   : > { %634 = vst [vmem:[%s306_s25 + $0x10] sm:$0xff] %v630_v43  ;;  %633 = vst [vmem:[%s306_s25 + $0x8] sm:$0xff] %v629_v44 }
 0x189   : > { %635 = vst [vmem:[%s306_s25 + $0x18] sm:$0xff] %v631_v46 }
 0x18a   : > { %1049 = shalt.err (!%p1046_p11)
}
 0x18b   : > { %s1050_s13 = scalar_lea.hbm %s1435_s29, 512  ;;  %s1054_s7 = scalar_lea.hbm %s1488_s4, 1024 }
 0x18c   : > { %p1051_p10 = scmp.ne.s32.totalorder %s1435_s29, %s1050_s13  ;;  %p1055_p7 = scmp.lt.u32.totalorder %s1435_s29, %s1488_s4 }
 0x18d   : > { %p1056_p6 = scmp.lt.u32.totalorder %s1054_s7, %s1050_s13  ;;  %p1058_p3 = scmp.lt.u32.totalorder %s1050_s13, %s1435_s29 }
 0x18e   : > { %p1052_p0 = pnand %p1051_p10, %p1518_p9 }
 0x18f   : > { %p1057_p2 = por %p1056_p6, %p1055_p7 }
 0x190   : > { %p1053_p8 = pneg %p1052_p0 }
 0x191   : > { %p1059_p13 = por %p1058_p3, %p1057_p2 }
 0x193   : > { %p1060_p4 = pnand %p1059_p13, %p1053_p8 }
 0x195   : > { %1063 = shalt.err (!%p1060_p4)
}
 0x196   : > { %840 = dma.vmem_to_hbm [thread:$0]  (%p1518_p9), %s1437_s30, 512, %s1435_s29, %s637_s18  }
 0x197 PF: > { %s665_s11 = sand.u32 1, %s1110_s15   ;;  %p1519_p12 = scmp.ne.s32.totalorder %s1502_s27, 0 }
 0x198   : > { %p1520_p5 = scmp.ge.s32.totalorder %s1130_s20, 2  ;;  %s666_s1 = scalar_lea.sflag [#allocation4], %s665_s11 }
 0x19a   : > { %p857_p1 = pnand %p1520_p5, %p1519_p12 }
 0x19c   : > { %1105 = dma.done.wait (!%p857_p1), %s666_s1, 512  }
 0x19d   : > { %1107 = vsyncadd (!%p857_p1), %s666_s1, 4294966784  ;;  %s24_s20 = sadd.s32 1, %s1130_s20   ;;  %s1521_s26 = sld [smem:[#allocation16_spill]] }
 0x19e   : > { %p21_p11 = scmp.ge.s32.totalorder %s24_s20, 4   ;;  %s1522_s15 = smov %s1114_s16 }
 0x19f   : > { %s1523_s16 = smov %s1118_s17  ;;  %s1524_s17 = smov %s1320_s24 }
 0x1a0   : > { %s1525_s18 = smov %s1126_s19  ;;  %23 = sbr.rel (!%p21_p11) target bundleno = 13 (0xd), region = 105 }
 0x1a3   : > { %s1526_s19 = smov %s1521_s26 }
 0x1a7   :  { %671 = vsyncpa [#allocation3], 1 }
 0x1a8   :  { %673 = vsyncpa [#allocation3 + $0x1], 1 }
 0x1a9   :  { %674 = vsyncpa [#allocation6], 1 }
 0x1aa   :  { %676 = vsyncpa [#allocation6 + $0x1], 1 }
 0x1ab   :  { %677 = vsyncpa [#allocation9], 1 }
 0x1ac   :  { %679 = vsyncpa [#allocation9 + $0x1], 1 }
 0x1ad   :  { %680 = vsyncpa [#allocation4], 1 }
 0x1ae   :  { %682 = vsyncpa [#allocation4 + $0x1], 1 }

</bundles_post_ra>
